<compile_context>
chip_gen: v5e
topology: v5e:2x2
jax: 0.10.0
libtpu: 0.0.40
codegen_flags: <defaults>
</compile_context>

<pallas_src>
import math

import jax
import jax.numpy as jnp
from jax.experimental import pallas as pl
from jax.experimental.pallas import tpu as pltpu


# ----------------------------------------------------------------------------- helpers
def _round_up(x, m):
    return ((x + m - 1) // m) * m


def _sublane(dtype):
    # Native packed sublane tile per itemsize: f32 -> 8, bf16 -> 16, int8/fp8 -> 32.
    return {4: 8, 2: 16, 1: 32}.get(jnp.dtype(dtype).itemsize, 8)


def _vmem_budget_bytes():
    # Generation-aware budget: ~3/4 of physical per-core VMEM, capped at 112 MiB.
    # v7x (64 MiB/TC) -> 48 MiB; v5e/v6e (128 MiB) -> 96 MiB.
    try:
        cap = pltpu.get_tpu_info().vmem_capacity_bytes
    except Exception:
        cap = 64 * 2**20  # conservative fallback (v7x per-TC VMEM)
    return min(int(cap * 3 // 4), 112 * 2**20)


def _pick_tm(M, tm_max, sublane):
    """Choose an M tile that is sublane-aligned and bounds padding waste (~<=25%)."""
    Ms = _round_up(M, sublane)
    tm = min(tm_max, Ms)
    tm = max(sublane, (tm // sublane) * sublane)
    while tm > sublane and (_round_up(Ms, tm) - Ms) * 4 > Ms:
        tm = max(sublane, ((tm // 2) // sublane) * sublane)
    return tm


# ----------------------------------------------------------------------------- kernels
def _resident_kernel(x_ref, w_ref, b_ref, o_ref):
    # Whole (padded) K reduction in one MXU pass; W block is VMEM-resident.
    acc = jnp.dot(x_ref[...], w_ref[...], preferred_element_type=jnp.float32)
    o_ref[...] = (acc + b_ref[...].astype(jnp.float32)).astype(o_ref.dtype)


def _tiled_kernel_f32out(x_ref, w_ref, b_ref, o_ref):
    # f32 output: accumulate directly into the output block (no scratch).
    k = pl.program_id(2)

    @pl.when(k == 0)
    def _():
        o_ref[...] = jnp.broadcast_to(b_ref[...].astype(jnp.float32), o_ref.shape)

    o_ref[...] += jnp.dot(x_ref[...], w_ref[...], preferred_element_type=jnp.float32)


def _tiled_kernel_scratch(x_ref, w_ref, b_ref, o_ref, acc_ref):
    # Low-precision output: keep an f32 VMEM accumulator, write back at k == last.
    k = pl.program_id(2)

    @pl.when(k == 0)
    def _():
        acc_ref[...] = jnp.zeros_like(acc_ref)

    acc_ref[...] += jnp.dot(x_ref[...], w_ref[...], preferred_element_type=jnp.float32)

    @pl.when(k == pl.num_programs(2) - 1)
    def _():
        o_ref[...] = (acc_ref[...] + b_ref[...].astype(jnp.float32)).astype(o_ref.dtype)


# ----------------------------------------------------------------------------- wrapper
def make_linear(weight, bias=None, *, compute_dtype=None,
                tm=512, tn=512, tk=1024,
                weight_resident=None, input_buffering=None):
    """Build an apply(x) for y = x @ weight.T + bias (nn.Linear forward).

    weight: (d_out, d_in) PyTorch layout; bias: (d_out,) or None.
    Weight transpose / padding / dtype cast is done ONCE here (hoisted out of
    the per-call hot path).  compute_dtype=jnp.bfloat16 enables bf16 MXU inputs
    with f32 accumulation; default keeps strict weight-dtype numerics.
    """
    d_out, d_in = weight.shape
    compute_dtype = jnp.dtype(compute_dtype if compute_dtype is not None else weight.dtype)
    c_itemsize = compute_dtype.itemsize
    sub = _sublane(compute_dtype)
    vmem_budget = _vmem_budget_bytes()

    # Lane-dense padded K / N sizes (independent of M, so they can be hoisted).
    tk_ = min(tk, _round_up(d_in, 128))
    tn_ = min(tn, _round_up(d_out, 128))
    Kp = _round_up(d_in, tk_)
    Np = _round_up(d_out, tn_)

    # ---- hoisted, once-per-parameter-set weight/bias preparation ----
    w_p = weight.T.astype(compute_dtype)                 # (d_in, d_out) -> plain matmul layout
    if (Kp, Np) != (d_in, d_out):
        w_p = jnp.pad(w_p, ((0, Kp - d_in), (0, Np - d_out)))
    if bias is None:
        b_p = jnp.zeros((1, Np), dtype=jnp.float32)
    else:
        b_p = bias.reshape(1, d_out).astype(jnp.float32)
        if Np != d_out:
            b_p = jnp.pad(b_p, ((0, 0), (0, Np - d_out)))

    w_bytes = Kp * Np * c_itemsize
    if weight_resident is None:
        # Keep W fully VMEM-resident when it takes at most ~1/3 of the budget
        # (counted x2 below for buffering headroom in the feasibility check).
        weight_resident = w_bytes <= vmem_budget // 3

    # -------------------------------------------------------------- resident path
    def _apply_resident(x2d, M, tm_r, out_dtype, lead):
        Mp = _round_up(M, tm_r)
        if (Mp, Kp) != x2d.shape:
            x2d = jnp.pad(x2d, ((0, Mp - M), (0, Kp - d_in)))
        m_blocks = Mp // tm_r
        # If M collapses to a single tile, split N so both v7x TensorCores get work.
        tn_r = Np // 2 if (m_blocks == 1 and Np % 256 == 0) else Np
        n_blocks = Np // tn_r

        cost = pl.CostEstimate(
            flops=2 * M * d_in * d_out, transcendentals=0,
            bytes_accessed=(Mp * Kp + Kp * Np) * c_itemsize
                           + Mp * Np * jnp.dtype(out_dtype).itemsize)

        out = pl.pallas_call(
            _resident_kernel,
            out_shape=jax.ShapeDtypeStruct((Mp, Np), out_dtype),
            grid_spec=pltpu.PrefetchScalarGridSpec(
                num_scalar_prefetch=0,
                grid=(n_blocks, m_blocks),     # N outer -> W block resident across M
                in_specs=[
                    pl.BlockSpec((tm_r, Kp), lambda j, i: (i, 0)),   # x tile
                    pl.BlockSpec((Kp, tn_r), lambda j, i: (0, j)),   # resident W
                    pl.BlockSpec((1, tn_r), lambda j, i: (0, j)),    # bias
                ],
                out_specs=pl.BlockSpec((tm_r, tn_r), lambda j, i: (i, j)),
            ),
            compiler_params=pltpu.CompilerParams(
                dimension_semantics=("parallel", "parallel"),
                vmem_limit_bytes=vmem_budget),
            cost_estimate=cost,
        )(x2d, w_p, b_p)
        return out[:M, :d_out].reshape(*lead, d_out)

    # -------------------------------------------------------------- tiled fallback
    def _apply_tiled(x2d, M, tm_t, out_dtype, lead):
        Mp = _round_up(M, tm_t)
        if (Mp, Kp) != x2d.shape:
            x2d = jnp.pad(x2d, ((0, Mp - M), (0, Kp - d_in)))
        grid = (Mp // tm_t, Np // tn_, Kp // tk_)

        if input_buffering is None:
            x_spec = pl.BlockSpec((tm_t, tk_), lambda i, j, k: (i, k))
            w_spec = pl.BlockSpec((tk_, tn_), lambda i, j, k: (k, j))
        else:
            # Optional deeper input pipelining (e.g. Buffered(3) on v5e).
            x_spec = pl.BlockSpec((tm_t, tk_), lambda i, j, k: (i, k),
                                  pipeline_mode=pl.Buffered(input_buffering))
            w_spec = pl.BlockSpec((tk_, tn_), lambda i, j, k: (k, j),
                                  pipeline_mode=pl.Buffered(input_buffering))
        b_spec = pl.BlockSpec((1, tn_), lambda i, j, k: (0, j))
        o_spec = pl.BlockSpec((tm_t, tn_), lambda i, j, k: (i, j))

        if jnp.dtype(out_dtype) == jnp.float32:
            kernel, scratch = _tiled_kernel_f32out, []
        else:
            kernel, scratch = _tiled_kernel_scratch, [pltpu.VMEM((tm_t, tn_), jnp.float32)]

        cost = pl.CostEstimate(
            flops=2 * M * d_in * d_out, transcendentals=0,
            bytes_accessed=(Mp * Kp * (Np // tn_) + Kp * Np * (Mp // tm_t)) * c_itemsize
                           + Mp * Np * jnp.dtype(out_dtype).itemsize)

        out = pl.pallas_call(
            kernel,
            out_shape=jax.ShapeDtypeStruct((Mp, Np), out_dtype),
            grid_spec=pltpu.PrefetchScalarGridSpec(
                num_scalar_prefetch=0, grid=grid,
                in_specs=[x_spec, w_spec, b_spec],
                out_specs=o_spec,
                scratch_shapes=scratch),
            compiler_params=pltpu.CompilerParams(
                dimension_semantics=("parallel", "parallel", "arbitrary"),
                vmem_limit_bytes=vmem_budget),
            cost_estimate=cost,
        )(x2d, w_p, b_p)
        return out[:M, :d_out].reshape(*lead, d_out)

    # -------------------------------------------------------------- per-call apply
    def apply(x):
        *lead, k_in = x.shape
        assert k_in == d_in, "weight/in-feature mismatch"
        out_dtype = x.dtype
        M = math.prod(lead) if lead else 1
        x2d = x.reshape(M, d_in).astype(compute_dtype)

        tm_0 = _pick_tm(M, tm, sub)

        if weight_resident:
            def fits(t):
                total = (2 * w_bytes
                         + 2 * t * Kp * c_itemsize
                         + 2 * t * Np * jnp.dtype(out_dtype).itemsize
                         + 2 * Np * 4)
                return total <= int(0.9 * vmem_budget)

            tm_r = tm_0
            while not fits(tm_r) and tm_r > sub:
                tm_r = max(sub, ((tm_r // 2) // sub) * sub)
            if fits(tm_r):
                return _apply_resident(x2d, M, tm_r, out_dtype, lead)
            # fall through to the K/N-tiled path if even the smallest tile won't fit

        return _apply_tiled(x2d, M, tm_0, out_dtype, lead)

    return apply


def linear(x, weight, bias=None, **kwargs):
    """One-shot y = x @ weight.T + bias.  For repeated calls with the same
    parameters, build make_linear(weight, bias) once and reuse apply(x)."""
    return make_linear(weight, bias, **kwargs)(x)


# ----------------------------------------------------------------------------- demo
if __name__ == "__main__":
    key = jax.random.PRNGKey(0)
    B, S, d_in, d_out = 2, 8, 32, 64  # batch, seq, in-features, out-features
    kx, kw, kb = jax.random.split(key, 3)

    x = jax.random.normal(kx, (B, S, d_in), dtype=jnp.float32)

    # Deterministic parameter init matching the module's __init__:
    #   init.xavier_normal_(weight): N(0, 2/(fan_in+fan_out))
    #   nn.Linear default bias:      U(-1/sqrt(fan_in), 1/sqrt(fan_in))
    std = math.sqrt(2.0 / (d_in + d_out))
    weight = std * jax.random.normal(kw, (d_out, d_in), dtype=jnp.float32)
    bound = 1.0 / math.sqrt(d_in)
    bias = jax.random.uniform(kb, (d_out,), minval=-bound, maxval=bound,
                              dtype=jnp.float32)

    ref = x @ weight.T + bias

    # 1) Default path: weight-resident kernel, strict f32 numerics.
    apply_fn = make_linear(weight, bias)       # transpose/pad hoisted here, once
    out = jax.block_until_ready(apply_fn(x))
    assert out.shape == ref.shape and out.dtype == x.dtype
    assert jnp.max(jnp.abs(out - ref)) < 1e-4

    # 2) Forced K/N-tiled path (exercises the reduction-grid kernel).
    out_t = jax.block_until_ready(make_linear(weight, bias, weight_resident=False)(x))
    assert jnp.max(jnp.abs(out_t - ref)) < 1e-4

    # 3) bf16 MXU inputs with f32 accumulation (looser tolerance).
    out_bf = jax.block_until_ready(
        make_linear(weight, bias, compute_dtype=jnp.bfloat16)(x))
    assert out_bf.dtype == x.dtype
    assert jnp.max(jnp.abs(out_bf - ref)) < 5e-2

    print("KERNEL_OK")
</pallas_src>

<mosaic_0001>
module attributes {stable_mosaic.version = 11 : i64} {
  func.func @_resident_kernel(%arg0: i32, %arg1: i32, %arg2: memref<16x128xf32, #tpu.memory_space<vmem>>, %arg3: memref<128x128xf32, #tpu.memory_space<vmem>>, %arg4: memref<1x128xf32, #tpu.memory_space<vmem>>, %arg5: memref<16x128xf32, #tpu.memory_space<vmem>>) attributes {dimension_semantics = [#tpu.dimension_semantics<parallel>, #tpu.dimension_semantics<parallel>], iteration_bounds = array<i64: 1, 1>, scalar_prefetch = 0 : i64, scratch_operands = 0 : i64, tpu.core_type = #tpu.core_type<tc>, window_params = [{transform_indices = @transform_0, window_bounds = array<i64: 16, 128>}, {transform_indices = @transform_1, window_bounds = array<i64: 128, 128>}, {transform_indices = @transform_2, window_bounds = array<i64: 1, 128>}, {transform_indices = @transform_3, window_bounds = array<i64: 16, 128>}]} {
    %c0 = arith.constant 0 : index
    %c0_0 = arith.constant 0 : index
    %0 = vector.load %arg2[%c0, %c0_0] : memref<16x128xf32, #tpu.memory_space<vmem>>, vector<16x128xf32>
    %c0_1 = arith.constant 0 : index
    %c0_2 = arith.constant 0 : index
    %1 = vector.load %arg3[%c0_1, %c0_2] : memref<128x128xf32, #tpu.memory_space<vmem>>, vector<128x128xf32>
    %cst = arith.constant dense<0.000000e+00> : vector<16x128xf32>
    %2 = tpu.matmul %0, %1, %cst {dimension_numbers = #tpu.dot_dimension_numbers<[1], [0], [0], [1], [0, 0, 1, 1], [], []>} : vector<16x128xf32>, vector<128x128xf32>, vector<16x128xf32> -> vector<16x128xf32>
    %c0_3 = arith.constant 0 : index
    %c0_4 = arith.constant 0 : index
    %3 = vector.load %arg4[%c0_3, %c0_4] : memref<1x128xf32, #tpu.memory_space<vmem>>, vector<1x128xf32>
    %4 = vector.broadcast %3 : vector<1x128xf32> to vector<16x128xf32>
    %5 = arith.addf %2, %4 : vector<16x128xf32>
    %c0_5 = arith.constant 0 : index
    %c0_6 = arith.constant 0 : index
    %6 = vector.load %arg5[%c0_5, %c0_6] : memref<16x128xf32, #tpu.memory_space<vmem>>, vector<16x128xf32>
    tpu.vector_store %arg5[%c0_5, %c0_6], %5 {strides = array<i32>} : memref<16x128xf32, #tpu.memory_space<vmem>>, vector<16x128xf32>,
    return
  }
  func.func @transform_0(%arg0: i32, %arg1: i32) -> (i32, i32) {
    %c0_i32 = arith.constant 0 : i32
    %c0_i32_0 = arith.constant 0 : i32
    return %arg1, %c0_i32 : i32, i32
  }
  func.func @transform_1(%arg0: i32, %arg1: i32) -> (i32, i32) {
    %c0_i32 = arith.constant 0 : i32
    %c0_i32_0 = arith.constant 0 : i32
    return %c0_i32, %arg0 : i32, i32
  }
  func.func @transform_2(%arg0: i32, %arg1: i32) -> (i32, i32) {
    %c0_i32 = arith.constant 0 : i32
    %c0_i32_0 = arith.constant 0 : i32
    return %c0_i32, %arg0 : i32, i32
  }
  func.func @transform_3(%arg0: i32, %arg1: i32) -> (i32, i32) {
    %c0_i32 = arith.constant 0 : i32
    return %arg1, %arg0 : i32, i32
  }
}

</mosaic_0001>

<bundles_post_ra>
// kernel: tpu_custom_call.1
= control target key start
LH: loop header
LB: loop body
LE: loop exit
PB: predicated region body
PF: predicated region fallthrough
CT: control target
= control target key end

     0   :  { %8 = vsyncpa [#allocation3], 0  ;;  %s260_s0 = inlined_call_operand.hbm [shape: f32[16,128], index: 0, kind: input, shape index: {}]   ;;  %s261_s1 = inlined_call_operand.hbm [shape: f32[128,128], index: 1, kind: input, shape index: {}]   ;;  %s262_s2 = inlined_call_operand.vmem [shape: f32[1,128], index: 2, kind: input, shape index: {}]   ;;  %s263_s3 = inlined_call_operand.hbm [shape: f32[16,128], index: 3, kind: output, shape index: {}]  }
   0x1   :  { %9 = vsyncpa [#allocation6], 0 }
   0x2   :  { %10 = vsyncpa [#allocation4], 0  ;;  %s15_s14 = sshll.u32 %s260_s0, 4  ;;  %s214_s15 = smov [#allocation2]   ;;  %s16_s14 = int_to_ptr.hbm [resolvable:$true] %s15_s14 }
   0x3   :  { %s17_s16 = sshll.u32 %s214_s15, 4  ;;  %s28_s19 = sshll.u32 %s261_s1, 4  ;;  %s18_s16 = int_to_ptr.vmem [resolvable:$true] %s17_s16  ;;  %s29_s19 = int_to_ptr.hbm [resolvable:$true] %s28_s19 }
   0x4   :  { %s215_s20 = smov 128   ;;  %s216_s21 = smov 8  }
   0x5   :  { %23 = dma.hbm_to_vmem [thread:$0]  %s16_s14, 256, %s18_s16, [#allocation3], %s215_s20, %s215_s20, %s216_s21  }
   0x6   :  { %s217_s22 = smov [#allocation5]  }
   0x7   :  { %s30_s23 = sshll.u32 %s217_s22, 4  ;;  %s31_s23 = int_to_ptr.vmem [resolvable:$true] %s30_s23 }
   0x8   :  { %36 = dma.hbm_to_vmem [thread:$0]  %s29_s19, 2048, %s31_s23, [#allocation6], %s215_s20, %s215_s20, %s216_s21  }
   0x9   :  { %208 = dma.done.wait [#allocation3], 256  }
   0xa   :  { %209 = vsyncadd [#allocation3], 4294967040 }
   0xb   :  { %210 = dma.done.wait [#allocation6], 2048  }
   0xc   :  { %211 = vsyncadd [#allocation6], 4294965248  ;;  %v64_v0 = vld [vmem:[#allocation5 + $0x78] sm:$0xff]  ;;  %v63_v1 = vld [vmem:[#allocation5 + $0x70] sm:$0xff]  ;;  %s218_s24 = smov [#allocation7]   ;;  %s100_s28 = sshll.u32 %s263_s3, 4  ;;  %s101_s28 = int_to_ptr.hbm [resolvable:$true] %s100_s28 }
   0xd   :  { %69 = vmatpush.msra.mxu0 %v64_v0  ;;  %114 = vmatpush.msra.mxu1 %v64_v0  ;;  %v62_v2 = vld [vmem:[#allocation5 + $0x68] sm:$0xff]  ;;  %v61_v3 = vld [vmem:[#allocation5 + $0x60] sm:$0xff]  ;;  %v60_v4 = vld [vmem:[#allocation5 + $0x58] sm:$0xff]  ;;  %s98_s25 = sshll.u32 %s218_s24, 4  ;;  %s99_s25 = int_to_ptr.vmem [resolvable:$true] %s98_s25 }
   0xe   :  { %v59_v5 = vld [vmem:[#allocation5 + $0x50] sm:$0xff]  ;;  %v58_v6 = vld [vmem:[#allocation5 + $0x48] sm:$0xff]  ;;  %v57_v7 = vld [vmem:[#allocation5 + $0x40] sm:$0xff] }
   0xf   :  { %70 = vmatpush.msra.mxu0 %v63_v1  ;;  %115 = vmatpush.msra.mxu1 %v63_v1  ;;  %v56_v8 = vld [vmem:[#allocation5 + $0x38] sm:$0xff]  ;;  %v55_v9 = vld [vmem:[#allocation5 + $0x30] sm:$0xff]  ;;  %v54_v10 = vld [vmem:[#allocation5 + $0x28] sm:$0xff] }
  0x10   :  { %v53_v11 = vld [vmem:[#allocation5 + $0x20] sm:$0xff]  ;;  %v52_v12 = vld [vmem:[#allocation5 + $0x18] sm:$0xff]  ;;  %v51_v13 = vld [vmem:[#allocation5 + $0x10] sm:$0xff] }
  0x11   :  { %71 = vmatpush.msra.mxu0 %v62_v2  ;;  %116 = vmatpush.msra.mxu1 %v62_v2  ;;  %v50_v14 = vld [vmem:[#allocation5 + $0x8] sm:$0xff]  ;;  %v49_v15 = vld [vmem:[#allocation5] sm:$0xff]  ;;  %v47_v16 = vld [vmem:[#allocation2] sm:$0xff] }
  0x12   :  { %v48_v17 = vld [vmem:[#allocation2 + $0x8] sm:$0xff]  ;;  %v135_v18 = vld [vmem:[%s262_s2] ss:$0 sm:$0xff] }
  0x13   :  { %72 = vmatpush.msra.mxu0 %v61_v3  ;;  %117 = vmatpush.msra.mxu1 %v61_v3 }
  0x15   :  { %73 = vmatpush.msra.mxu0 %v60_v4  ;;  %118 = vmatpush.msra.mxu1 %v60_v4 }
  0x17   :  { %74 = vmatpush.msra.mxu0 %v59_v5  ;;  %119 = vmatpush.msra.mxu1 %v59_v5 }
  0x19   :  { %75 = vmatpush.msra.mxu0 %v58_v6  ;;  %120 = vmatpush.msra.mxu1 %v58_v6 }
  0x1b   :  { %76 = vmatpush.msra.mxu0 %v57_v7  ;;  %121 = vmatpush.msra.mxu1 %v57_v7 }
  0x1d   :  { %77 = vmatpush.msra.mxu0 %v56_v8  ;;  %122 = vmatpush.msra.mxu1 %v56_v8 }
  0x1f   :  { %78 = vmatpush.msra.mxu0 %v55_v9  ;;  %123 = vmatpush.msra.mxu1 %v55_v9 }
  0x21   :  { %79 = vmatpush.msra.mxu0 %v54_v10  ;;  %124 = vmatpush.msra.mxu1 %v54_v10 }
  0x23   :  { %80 = vmatpush.msra.mxu0 %v53_v11  ;;  %125 = vmatpush.msra.mxu1 %v53_v11 }
  0x25   :  { %81 = vmatpush.msra.mxu0 %v52_v12  ;;  %126 = vmatpush.msra.mxu1 %v52_v12 }
  0x27   :  { %82 = vmatpush.msra.mxu0 %v51_v13  ;;  %127 = vmatpush.msra.mxu1 %v51_v13 }
  0x29   :  { %83 = vmatpush.msra.mxu0 %v50_v14  ;;  %128 = vmatpush.msra.mxu1 %v50_v14 }
  0x2b   :  { %84 = vmatpush.msra.mxu0 %v49_v15  ;;  %129 = vmatpush.msra.mxu1 %v49_v15 }
  0x2c   :  { %85 = vmatmul.f32.vlgmr.msra.gmra.mxu0 %v47_v16  ;;  %88 = vmatmul.f32.vlgmr.msra.gmra.mxu1 %v48_v17 }
  0xa9   :  { %v86_v19 = vpop.f32.mrf.mxu0  ;;  %v89_v20 = vpop.f32.mrf.mxu1 }
  0xaa   :  { %v87_v21 = vadd.f32 %v135_v18, %v86_v19  ;;  %v90_v22 = vadd.f32 %v135_v18, %v89_v20 }
  0xac   :  { %92 = vst [vmem:[#allocation7] sm:$0xff] %v87_v21 }
  0xad   :  { %93 = vst [vmem:[#allocation7 + $0x8] sm:$0xff] %v90_v22 }
  0xae   :  { %106 = dma.vmem_to_hbm [thread:$0]  %s99_s25, 256, %s101_s28, [#allocation4], %s215_s20, %s215_s20, %s216_s21  }
  0xaf   :  { %212 = dma.done.wait [#allocation4], 256  }
  0xb0   :  { %213 = vsyncadd [#allocation4], 4294967040 }
  0xb1   :  { %111 = vsyncpa [#allocation3], 1 }
  0xb2   :  { %112 = vsyncpa [#allocation6], 1 }
  0xb3   :  { %113 = vsyncpa [#allocation4], 1 }

</bundles_post_ra>
